<compile_context>
chip_gen: v5e
topology: v5e:2x2
jax: 0.10.0
libtpu: 0.0.40
codegen_flags: <defaults>
</compile_context>

<pallas_src>
import numpy as np
import jax
import jax.numpy as jnp
from jax import lax
from jax.experimental import pallas as pl
from jax.experimental.pallas import tpu as pltpu


def _make_kernel(l_true, chunk=8):
    """Per-tile gather kernel: out[r,l] = pos_weight[seq[r,l]]."""
    n_chunks = -(-l_true // chunk)

    def kernel(tile_max_ref, seq_ref, pw_ref, out_ref):
        # tile_max_ref : SMEM (num_tiles,)     int32  max in-bag position in each tile
        # seq_ref      : VMEM (tile_rows, 128) int32  in-bag position per element (clamped)
        # pw_ref       : SMEM (l_true,)        f32    position-weight table (scalar splats)
        # out_ref      : VMEM (tile_rows, 128) f32    gathered weights
        i = pl.program_id(0)
        seq = seq_ref[...]
        tmax = tile_max_ref[i]

        def chunk_sum(c0):
            # sum_k where(seq == k, pw[k], 0) over k in [c0, min(c0+chunk, l_true)).
            # Exactly one k matches each element; a balanced tree keeps the add
            # dependence depth at log2(chunk) so the 4 VALU slots stay busy.
            terms = [jnp.where(seq == k, pw_ref[k], 0.0)
                     for k in range(c0, min(c0 + chunk, l_true))]
            while len(terms) > 1:
                nxt = [terms[t] + terms[t + 1] for t in range(0, len(terms) - 1, 2)]
                if len(terms) % 2:
                    nxt.append(terms[-1])
                terms = nxt
            return terms[0]

        # Chunk 0 always runs (covers seq == 0, including the padded tail) and
        # initializes the output block -> no separate zero pass.
        out_ref[...] = chunk_sum(0)

        # Later chunks only run if some element in this tile reaches that
        # position range (data-dependent gather truncation).
        for c in range(1, n_chunks):
            c0 = c * chunk

            @pl.when(c0 <= tmax)
            def _(c0=c0):
                out_ref[...] = out_ref[...] + chunk_sum(c0)

    return kernel


def position_weighted_forward(values, lengths, pos_weight, *, tile_rows=64):
    """One feature key of PositionWeightedModule.forward.

    values     : (N,)  any dtype   (passed through unchanged)
    lengths    : (B,)  int         per-bag lengths, sum(lengths) == N
    pos_weight : (L,)  float32     learned per-position weights (L == max_feature_length)

    Returns (values, lengths, weights) with weights[j] = pos_weight[pos_in_bag(j)].
    """
    n_total = int(values.shape[0])
    batch = int(lengths.shape[0])
    l_true = int(pos_weight.shape[0])

    # Degenerate cases (empty batch / no values): nothing to weight.
    if n_total == 0 or batch == 0 or l_true == 0:
        return values, lengths, jnp.zeros((n_total,), jnp.float32)

    # Shrink the tile for tiny inputs; keep the (8,128) minimum, rows % 8 == 0.
    rows_needed = -(-n_total // 128)
    tile_rows = max(8, min(int(tile_rows), -(-rows_needed // 8) * 8))
    tile_rows = -(-tile_rows // 8) * 8

    TILE = tile_rows * 128
    num_tiles = -(-n_total // TILE)
    n_pad = num_tiles * TILE
    n_rows = n_pad // 128

    # ---- wrapper glue (plain JAX, fused by XLA): vectorized offsets_range ----
    lengths_i = lengths.astype(jnp.int32)
    csum = jnp.cumsum(lengths_i)
    offsets = csum - lengths_i                          # exclusive per-bag start offsets
    pos = jnp.arange(n_total, dtype=jnp.int32)
    bag = jnp.searchsorted(csum, pos, side="right").astype(jnp.int32)  # skips empty bags
    seq = pos - jnp.take(offsets, bag)                  # in-bag position of each element
    # Contract: lengths <= max_feature_length.  torch.gather would raise OOB for
    # longer bags; we clamp instead so the kernel's gather loop stays bounded.
    # TODO(synk): optionally surface an error for out-of-contract inputs.
    seq = jnp.clip(seq, 0, l_true - 1).astype(jnp.int32)

    seq_flat = jnp.zeros((n_pad,), jnp.int32).at[:n_total].set(seq)
    seq2d = seq_flat.reshape(n_rows, 128)
    tile_max = jnp.max(seq_flat.reshape(num_tiles, TILE), axis=1).astype(jnp.int32)
    pw = pos_weight.astype(jnp.float32)

    kernel = _make_kernel(l_true)

    cost = pl.CostEstimate(
        flops=int(2 * n_pad * l_true),
        transcendentals=0,
        bytes_accessed=int(4 * (2 * n_pad + num_tiles + l_true)))

    out = pl.pallas_call(
        kernel,
        out_shape=jax.ShapeDtypeStruct((n_rows, 128), jnp.float32),
        grid_spec=pltpu.PrefetchScalarGridSpec(
            num_scalar_prefetch=1,                      # per-tile max position (SMEM)
            grid=(num_tiles,),
            in_specs=[
                pl.BlockSpec((tile_rows, 128), lambda i, tm: (i, 0)),   # seq (VMEM)
                pl.BlockSpec(memory_space=pltpu.MemorySpace.SMEM),      # pw  (SMEM scalars)
            ],
            out_specs=pl.BlockSpec((tile_rows, 128), lambda i, tm: (i, 0)),
        ),
        compiler_params=pltpu.CompilerParams(
            dimension_semantics=("parallel",),
            vmem_limit_bytes=32 * 1024 * 1024),
        cost_estimate=cost,
    )(tile_max, seq2d, pw)

    weights = out.reshape(-1)[:n_total]
    return values, lengths, weights


class PositionWeightedModuleJAX:
    """JAX/Pallas analogue of torchrec PositionWeightedModule.

    Parameters are initialized exactly like the PyTorch module:
    torch.empty([length]).fill_(1.0)  ->  jnp.ones((length,), float32).
    """

    def __init__(self, max_feature_lengths):
        self.max_feature_lengths = dict(max_feature_lengths)
        self.position_weights = {
            key: jnp.ones((length,), dtype=jnp.float32)
            for key, length in self.max_feature_lengths.items()
        }

    def forward(self, features):
        # features: {key: {"values": (N,), "lengths": (B,) int32}}
        # TODO(synk): fuse all feature keys into a single pallas_call (concat values,
        # flattened tile grid, per-key table offset via scalar prefetch) to remove
        # per-key launch overhead; kept per-key here for clarity.
        ret = {}
        for key, pos_weight in self.position_weights.items():
            vals = features[key]["values"]
            lens = features[key]["lengths"]
            v, l, w = position_weighted_forward(vals, lens, pos_weight)
            ret[key] = {"values": v, "lengths": l, "weights": w}
        return ret


def _reference_weights(lengths_np, pos_weight_np):
    """Pure numpy reference: gather(pos_weight, offsets_range(lengths))."""
    if lengths_np.size == 0 or int(lengths_np.sum()) == 0:
        return np.zeros((0,), np.float32)
    seq = np.concatenate([np.arange(int(l)) for l in lengths_np])
    return pos_weight_np[seq]


if __name__ == "__main__":
    key = jax.random.PRNGKey(0)
    k1, k2, k3 = jax.random.split(key, 3)

    # Two feature keys, small jagged shapes (includes a zero-length bag).
    max_feature_lengths = {"f_click": 8, "f_view": 6}
    module = PositionWeightedModuleJAX(max_feature_lengths)

    features = {
        "f_click": {
            "lengths": jnp.array([3, 0, 5, 2], dtype=jnp.int32),        # B=4, N=10
            "values": jax.random.randint(k1, (10,), 0, 1000, jnp.int32),
        },
        "f_view": {
            "lengths": jnp.array([1, 4, 2], dtype=jnp.int32),           # B=3, N=7
            "values": jax.random.randint(k2, (7,), 0, 1000, jnp.int32),
        },
    }

    out = module.forward(features)
    jax.block_until_ready(out)

    ok = True
    for fkey in max_feature_lengths:
        lens_np = np.asarray(features[fkey]["lengths"])
        pw_np = np.asarray(module.position_weights[fkey])
        ref_w = _reference_weights(lens_np, pw_np)
        got_w = np.asarray(out[fkey]["weights"])
        ok &= np.allclose(got_w, ref_w, atol=1e-6)
        ok &= np.array_equal(np.asarray(out[fkey]["values"]),
                             np.asarray(features[fkey]["values"]))

    # Non-trivial (ramp) weight table exercises the gather path.
    ramp_pw = jnp.arange(8, dtype=jnp.float32) * 0.5 + 1.0
    _, _, ramp_w = position_weighted_forward(
        features["f_click"]["values"], features["f_click"]["lengths"], ramp_pw)
    jax.block_until_ready(ramp_w)
    ramp_ref = _reference_weights(np.asarray(features["f_click"]["lengths"]),
                                  np.asarray(ramp_pw))
    ok &= np.allclose(np.asarray(ramp_w), ramp_ref, atol=1e-6)

    # Multi-tile case: 3 grid steps at tile_rows=8 (1024 values/tile), many zero-length
    # bags, max length 16 > chunk size 8 so the pl.when gather-truncation path runs.
    pattern = np.array([3, 0, 7, 1, 16, 2, 0, 5], dtype=np.int32)
    lens_big_np = np.tile(pattern, 74)                     # B=592, N=2516, max len 16
    n_big = int(lens_big_np.sum())
    lens_big = jnp.asarray(lens_big_np)
    vals_big = jax.random.randint(k3, (n_big,), 0, 1000, jnp.int32)
    pw_big = jnp.arange(16, dtype=jnp.float32) * 0.25 + 0.5
    _, _, w_big = position_weighted_forward(vals_big, lens_big, pw_big, tile_rows=8)
    jax.block_until_ready(w_big)
    ok &= np.allclose(np.asarray(w_big),
                      _reference_weights(lens_big_np, np.asarray(pw_big)), atol=1e-6)

    # Truncation-skip case: all bags shorter (<=4) than the table (16), so the
    # second gather chunk is skipped at runtime via pl.when and must not change results.
    lens_short_np = np.tile(np.array([2, 0, 3, 1, 4], dtype=np.int32), 60)   # N=600
    n_short = int(lens_short_np.sum())
    lens_short = jnp.asarray(lens_short_np)
    vals_short = jnp.arange(n_short, dtype=jnp.int32)
    _, _, w_short = position_weighted_forward(vals_short, lens_short, pw_big)
    jax.block_until_ready(w_short)
    ok &= np.allclose(np.asarray(w_short),
                      _reference_weights(lens_short_np, np.asarray(pw_big)), atol=1e-6)

    if ok:
        print("KERNEL_OK")
    else:
        print("MISMATCH")
</pallas_src>

<mosaic_0001>
module attributes {stable_mosaic.version = 11 : i64} {
  func.func @kernel(%arg0: i32, %arg1: memref<1xi32, #tpu.memory_space<smem>>, %arg2: memref<8x128xi32, #tpu.memory_space<vmem>>, %arg3: memref<8xf32, #tpu.memory_space<smem>>, %arg4: memref<8x128xf32, #tpu.memory_space<vmem>>) attributes {dimension_semantics = [#tpu.dimension_semantics<parallel>], iteration_bounds = array<i64: 1>, scalar_prefetch = 1 : i64, scratch_operands = 0 : i64, tpu.core_type = #tpu.core_type<tc>, window_params = [{transform_indices = @transform_0, window_bounds = array<i64: 8, 128>}, {transform_indices = @transform_1, window_bounds = array<i64: 8>}, {transform_indices = @transform_2, window_bounds = array<i64: 8, 128>}]} {
    %c0 = arith.constant 0 : index
    %c0_0 = arith.constant 0 : index
    %0 = vector.load %arg2[%c0, %c0_0] : memref<8x128xi32, #tpu.memory_space<vmem>>, vector<8x128xi32>
    %c0_i32 = arith.constant 0 : i32
    %1 = vector.broadcast %c0_i32 : i32 to vector<8x128xi32>
    %2 = arith.cmpi eq, %0, %1 : vector<8x128xi32>
    %c0_1 = arith.constant 0 : index
    %3 = memref.load %arg3[%c0_1] : memref<8xf32, #tpu.memory_space<smem>>
    %cst = arith.constant 0.000000e+00 : f32
    %4 = vector.broadcast %3 : f32 to vector<8x128xf32>
    %5 = vector.broadcast %cst : f32 to vector<8x128xf32>
    %6 = arith.select %2, %4, %5 : vector<8x128xi1>, vector<8x128xf32>
    %c1_i32 = arith.constant 1 : i32
    %7 = vector.broadcast %c1_i32 : i32 to vector<8x128xi32>
    %8 = arith.cmpi eq, %0, %7 : vector<8x128xi32>
    %c1 = arith.constant 1 : index
    %9 = memref.load %arg3[%c1] : memref<8xf32, #tpu.memory_space<smem>>
    %cst_2 = arith.constant 0.000000e+00 : f32
    %10 = vector.broadcast %9 : f32 to vector<8x128xf32>
    %11 = vector.broadcast %cst_2 : f32 to vector<8x128xf32>
    %12 = arith.select %8, %10, %11 : vector<8x128xi1>, vector<8x128xf32>
    %c2_i32 = arith.constant 2 : i32
    %13 = vector.broadcast %c2_i32 : i32 to vector<8x128xi32>
    %14 = arith.cmpi eq, %0, %13 : vector<8x128xi32>
    %c2 = arith.constant 2 : index
    %15 = memref.load %arg3[%c2] : memref<8xf32, #tpu.memory_space<smem>>
    %cst_3 = arith.constant 0.000000e+00 : f32
    %16 = vector.broadcast %15 : f32 to vector<8x128xf32>
    %17 = vector.broadcast %cst_3 : f32 to vector<8x128xf32>
    %18 = arith.select %14, %16, %17 : vector<8x128xi1>, vector<8x128xf32>
    %c3_i32 = arith.constant 3 : i32
    %19 = vector.broadcast %c3_i32 : i32 to vector<8x128xi32>
    %20 = arith.cmpi eq, %0, %19 : vector<8x128xi32>
    %c3 = arith.constant 3 : index
    %21 = memref.load %arg3[%c3] : memref<8xf32, #tpu.memory_space<smem>>
    %cst_4 = arith.constant 0.000000e+00 : f32
    %22 = vector.broadcast %21 : f32 to vector<8x128xf32>
    %23 = vector.broadcast %cst_4 : f32 to vector<8x128xf32>
    %24 = arith.select %20, %22, %23 : vector<8x128xi1>, vector<8x128xf32>
    %c4_i32 = arith.constant 4 : i32
    %25 = vector.broadcast %c4_i32 : i32 to vector<8x128xi32>
    %26 = arith.cmpi eq, %0, %25 : vector<8x128xi32>
    %c4 = arith.constant 4 : index
    %27 = memref.load %arg3[%c4] : memref<8xf32, #tpu.memory_space<smem>>
    %cst_5 = arith.constant 0.000000e+00 : f32
    %28 = vector.broadcast %27 : f32 to vector<8x128xf32>
    %29 = vector.broadcast %cst_5 : f32 to vector<8x128xf32>
    %30 = arith.select %26, %28, %29 : vector<8x128xi1>, vector<8x128xf32>
    %c5_i32 = arith.constant 5 : i32
    %31 = vector.broadcast %c5_i32 : i32 to vector<8x128xi32>
    %32 = arith.cmpi eq, %0, %31 : vector<8x128xi32>
    %c5 = arith.constant 5 : index
    %33 = memref.load %arg3[%c5] : memref<8xf32, #tpu.memory_space<smem>>
    %cst_6 = arith.constant 0.000000e+00 : f32
    %34 = vector.broadcast %33 : f32 to vector<8x128xf32>
    %35 = vector.broadcast %cst_6 : f32 to vector<8x128xf32>
    %36 = arith.select %32, %34, %35 : vector<8x128xi1>, vector<8x128xf32>
    %c6_i32 = arith.constant 6 : i32
    %37 = vector.broadcast %c6_i32 : i32 to vector<8x128xi32>
    %38 = arith.cmpi eq, %0, %37 : vector<8x128xi32>
    %c6 = arith.constant 6 : index
    %39 = memref.load %arg3[%c6] : memref<8xf32, #tpu.memory_space<smem>>
    %cst_7 = arith.constant 0.000000e+00 : f32
    %40 = vector.broadcast %39 : f32 to vector<8x128xf32>
    %41 = vector.broadcast %cst_7 : f32 to vector<8x128xf32>
    %42 = arith.select %38, %40, %41 : vector<8x128xi1>, vector<8x128xf32>
    %c7_i32 = arith.constant 7 : i32
    %43 = vector.broadcast %c7_i32 : i32 to vector<8x128xi32>
    %44 = arith.cmpi eq, %0, %43 : vector<8x128xi32>
    %c7 = arith.constant 7 : index
    %45 = memref.load %arg3[%c7] : memref<8xf32, #tpu.memory_space<smem>>
    %cst_8 = arith.constant 0.000000e+00 : f32
    %46 = vector.broadcast %45 : f32 to vector<8x128xf32>
    %47 = vector.broadcast %cst_8 : f32 to vector<8x128xf32>
    %48 = arith.select %44, %46, %47 : vector<8x128xi1>, vector<8x128xf32>
    %49 = arith.addf %6, %12 : vector<8x128xf32>
    %50 = arith.addf %18, %24 : vector<8x128xf32>
    %51 = arith.addf %30, %36 : vector<8x128xf32>
    %52 = arith.addf %42, %48 : vector<8x128xf32>
    %53 = arith.addf %49, %50 : vector<8x128xf32>
    %54 = arith.addf %51, %52 : vector<8x128xf32>
    %55 = arith.addf %53, %54 : vector<8x128xf32>
    %c0_9 = arith.constant 0 : index
    %c0_10 = arith.constant 0 : index
    %56 = vector.load %arg4[%c0_9, %c0_10] : memref<8x128xf32, #tpu.memory_space<vmem>>, vector<8x128xf32>
    tpu.vector_store %arg4[%c0_9, %c0_10], %55 {strides = array<i32>} : memref<8x128xf32, #tpu.memory_space<vmem>>, vector<8x128xf32>,
    return
  }
  func.func @transform_0(%arg0: i32, %arg1: memref<1xi32, #tpu.memory_space<smem>>) -> (i32, i32) {
    %c0_i32 = arith.constant 0 : i32
    %c0_i32_0 = arith.constant 0 : i32
    return %arg0, %c0_i32 : i32, i32
  }
  func.func @transform_1(%arg0: i32, %arg1: memref<1xi32, #tpu.memory_space<smem>>) -> i32 {
    %c0_i32 = arith.constant 0 : i32
    %c0_i32_0 = arith.constant 0 : i32
    return %c0_i32 : i32
  }
  func.func @transform_2(%arg0: i32, %arg1: memref<1xi32, #tpu.memory_space<smem>>) -> (i32, i32) {
    %c0_i32 = arith.constant 0 : i32
    %c0_i32_0 = arith.constant 0 : i32
    return %arg0, %c0_i32 : i32, i32
  }
}

</mosaic_0001>

<bundles_post_ra>
// kernel: tpu_custom_call.1
= control target key start
LH: loop header
LB: loop body
LE: loop exit
PB: predicated region body
PF: predicated region fallthrough
CT: control target
= control target key end

     0   :  { %9 = vsyncpa [#allocation5], 0  ;;  %s208_s0 = inlined_call_operand.<no memory space> [shape: s32[1], index: 0, kind: input, shape index: {}]   ;;  %s209_s1 = inlined_call_operand.hbm [shape: s32[8,128], index: 1, kind: input, shape index: {}]   ;;  %s210_s2 = inlined_call_operand.vmem [shape: f32[8], index: 2, kind: input, shape index: {}]   ;;  %s211_s3 = inlined_call_operand.hbm [shape: f32[8,128], index: 3, kind: output, shape index: {}]  }
   0x1   :  { %10 = vsyncpa [#allocation7], 0 }
   0x2   :  { %11 = vsyncpa [#allocation6], 0  ;;  %s17_s14 = sshll.u32 %s209_s1, 4  ;;  %s176_s15 = smov [#allocation4]   ;;  %s18_s14 = int_to_ptr.hbm [resolvable:$true] %s17_s14 }
   0x3   :  { %s19_s16 = sshll.u32 %s176_s15, 4  ;;  %s28_s18 = sshll.u32 %s210_s2, 4  ;;  %s20_s16 = int_to_ptr.vmem [resolvable:$true] %s19_s16  ;;  %s29_s18 = int_to_ptr.vmem [resolvable:$true] %s28_s18 }
   0x4   :  { %22 = dma.hbm_to_vmem [thread:$0]  %s18_s14, 128, %s20_s16, [#allocation5]  }
   0x5   :  { %s177_s19 = smov [#allocation8]  }
   0x6   :  { %31 = dma.vmem_to_smem %s29_s18, 16, %s177_s19, [#allocation7]  }
   0x7   :  { %170 = dma.done.wait [#allocation5], 128  }
   0x8   :  { %171 = vsyncadd [#allocation5], 4294967168 }
   0x9   :  { %172 = dma.done.wait [#allocation7], 16  }
   0xa   :  { %173 = vsyncadd [#allocation7], 4294967280 }
   0xb   :  { %40 = sfence }
   0xc   :  { %s43_s20 = sld [smem:[#allocation8]]  ;;  %v41_v0 = vld [vmem:[#allocation4] sm:$0xff]  ;;  %s178_s26 = smov [#allocation9]  }
   0xd   :  { %s100_s21 = sld [smem:[#allocation8 + $0x1]]  ;;  %vm42_vm0 = vcmp.eq.s32.totalorder %v41_v0, 0  ;;  %vm46_vm1 = vcmp.eq.s32.totalorder %v41_v0, 1  ;;  %vm50_vm2 = vcmp.eq.s32.totalorder %v41_v0, 2  ;;  %vm54_vm3 = vcmp.eq.s32.totalorder %v41_v0, 3  ;;  %s87_s27 = sshll.u32 %s178_s26, 4  ;;  %s88_s27 = int_to_ptr.vmem [resolvable:$true] %s87_s27 }
   0xe   :  { %s101_s1 = sld [smem:[#allocation8 + $0x2]]  ;;  %vm58_vm4 = vcmp.eq.s32.totalorder %v41_v0, 4  ;;  %vm62_vm5 = vcmp.eq.s32.totalorder %v41_v0, 5  ;;  %vm66_vm6 = vcmp.eq.s32.totalorder %v41_v0, 6  ;;  %vm70_vm7 = vcmp.eq.s32.totalorder %v41_v0, 7  ;;  %s89_s30 = sshll.u32 %s211_s3, 4  ;;  %s90_s30 = int_to_ptr.hbm [resolvable:$true] %s89_s30 }
   0xf   :  { %s102_s22 = sld [smem:[#allocation8 + $0x3]] }
  0x10   :  { %s103_s23 = sld [smem:[#allocation8 + $0x4]] }
  0x11   :  { %s104_s24 = sld [smem:[#allocation8 + $0x5]] }
  0x12   :  { %v44_v1 = vstv %s43_s20  ;;  %s105_s2 = sld [smem:[#allocation8 + $0x6]] }
  0x13   :  { %v48_v2 = vstv %s100_s21  ;;  %s106_s25 = sld [smem:[#allocation8 + $0x7]]  ;;  %v45_v3 = vsel %vm42_vm0, %v44_v1, 0.0 }
  0x14   :  { %v49_v4 = vsel %vm46_vm1, %v48_v2, 0.0  ;;  %v52_v5 = vstv %s101_s1 }
  0x15   :  { %v53_v6 = vsel %vm50_vm2, %v52_v5, 0.0  ;;  %v56_v7 = vstv %s102_s22  ;;  %v74_v12 = vadd.f32 %v49_v4, %v45_v3 }
  0x16   :  { %v57_v8 = vsel %vm54_vm3, %v56_v7, 0.0  ;;  %v60_v9 = vstv %s103_s23 }
  0x17   :  { %v61_v10 = vsel %vm58_vm4, %v60_v9, 0.0  ;;  %v64_v11 = vstv %s104_s24  ;;  %v75_v13 = vadd.f32 %v57_v8, %v53_v6 }
  0x18   :  { %v65_v14 = vsel %vm62_vm5, %v64_v11, 0.0  ;;  %v68_v15 = vstv %s105_s2 }
  0x19   :  { %v69_v16 = vsel %vm66_vm6, %v68_v15, 0.0  ;;  %v72_v17 = vstv %s106_s25  ;;  %v76_v18 = vadd.f32 %v65_v14, %v61_v10  ;;  %v78_v21 = vadd.f32 %v75_v13, %v74_v12 }
  0x1a   :  { %v73_v19 = vsel %vm70_vm7, %v72_v17, 0.0 }
  0x1b   :  { %v77_v20 = vadd.f32 %v73_v19, %v69_v16 }
  0x1d   :  { %v79_v22 = vadd.f32 %v77_v20, %v76_v18 }
  0x1f   :  { %v80_v23 = vadd.f32 %v79_v22, %v78_v21 }
  0x21   :  { %81 = vst [vmem:[#allocation9] sm:$0xff] %v80_v23 }
  0x22   :  { %92 = dma.vmem_to_hbm [thread:$0]  %s88_s27, 128, %s90_s30, [#allocation6]  }
  0x23   :  { %174 = dma.done.wait [#allocation6], 128  }
  0x24   :  { %175 = vsyncadd [#allocation6], 4294967168 }
  0x25   :  { %97 = vsyncpa [#allocation5], 1 }
  0x26   :  { %98 = vsyncpa [#allocation6], 1 }
  0x27   :  { %99 = vsyncpa [#allocation7], 1 }

</bundles_post_ra>
